<compile_context>
chip_gen: v6e
topology: v6e:2x2x1
jax: 0.10.0
libtpu: 0.0.40
codegen_flags: <defaults>
</compile_context>

<pallas_src>
import math
import functools
from typing import NamedTuple, Tuple

import jax
import jax.numpy as jnp
from jax.experimental import pallas as pl
from jax.experimental.pallas import tpu as pltpu


def _round_up(n: int, m: int) -> int:
    return ((n + m - 1) // m) * m


def _lane_pad(d: int) -> int:
    # 256-wide MXU on v6e/v7x: use 256-multiples once dims are big enough,
    # otherwise 128 (one vreg lane tile) is enough and wastes less.
    return _round_up(d, 256) if d >= 256 else _round_up(d, 128)


class PreparedMLP(NamedTuple):
    weights_pad: Tuple[jax.Array, ...]  # layer i: (K_i, out_pad_i); K_0 = input_size
    bias_pack: jax.Array                # (num_layers, max_out_pad) f32
    input_size: int
    output_size: int
    compute_dtype_name: str


def prepare_params(weights, biases, compute_dtype=jnp.float32) -> PreparedMLP:
    """Pad / pack / cast parameters ONCE (hoisted out of the per-step path).

    weights: list of (in_f, out_f) arrays (PyTorch nn.Linear weight transposed)
    biases : list of (out_f,) or (1, out_f) arrays
    """
    compute_dtype = jnp.dtype(compute_dtype)
    num_layers = len(weights)
    input_size = int(weights[0].shape[0])
    output_size = int(weights[-1].shape[1])

    out_pads = [_lane_pad(int(w.shape[1])) for w in weights]
    max_out_pad = max(out_pads)

    weights_pad = []
    for i, w in enumerate(weights):
        in_f, out_f = int(w.shape[0]), int(w.shape[1])
        # Layer 0 keeps its true K (== input_size) so x needs NO feature
        # padding in HBM; later layers' K matches the previous padded output.
        k_pad = in_f if i == 0 else out_pads[i - 1]
        wp = jnp.zeros((k_pad, out_pads[i]), compute_dtype)
        wp = wp.at[:in_f, :out_f].set(w.astype(compute_dtype))
        weights_pad.append(wp)

    bias_pack = jnp.zeros((num_layers, max_out_pad), jnp.float32)
    for i, b in enumerate(biases):
        b2 = jnp.reshape(b.astype(jnp.float32), (-1,))
        bias_pack = bias_pack.at[i, : b2.shape[0]].set(b2)

    return PreparedMLP(tuple(weights_pad), bias_pack, input_size, output_size,
                       compute_dtype.name)


def _make_mlp_kernel(num_layers: int, compute_dtype):
    """Fused MLP kernel.

    Ref order: (x, w0, ..., w_{L-1}, bias_pack, out).
      x         : (block_b, input_size)          f32
      w_i       : (K_i, out_pad_i)               compute_dtype, zero padded
      bias_pack : (num_layers, max_out_pad)      f32
      out       : (block_b, out_pad_last)        f32
    ReLU after every layer except the last (matches Network.forward).
    """

    def kernel(*refs):
        x_ref = refs[0]
        w_refs = refs[1:1 + num_layers]
        b_ref = refs[1 + num_layers]
        out_ref = refs[2 + num_layers]

        h = x_ref[...]
        for i in range(num_layers):
            if h.dtype != compute_dtype:
                h = h.astype(compute_dtype)
            w = w_refs[i][...]
            out_pad = w.shape[1]
            # MXU matmul with f32 accumulation.
            h = jnp.dot(h, w, preferred_element_type=jnp.float32)
            h = h + b_ref[i:i + 1, :out_pad]      # (1, out_pad) f32, static slice
            if i < num_layers - 1:
                h = jnp.maximum(h, 0.0)           # ReLU on hidden layers only
        out_ref[...] = h.astype(out_ref.dtype)

    return kernel


@functools.partial(jax.jit, static_argnames=("block_b", "compute_dtype_name"))
def _mlp_forward_padded(x_pad, weights_pad, bias_pack, *, block_b,
                        compute_dtype_name):
    compute_dtype = jnp.dtype(compute_dtype_name)
    num_layers = len(weights_pad)
    batch_pad, in_size = x_pad.shape
    out_pad_last = weights_pad[-1].shape[1]
    max_out_pad = bias_pack.shape[1]
    grid = (batch_pad // block_b,)

    kernel = _make_mlp_kernel(num_layers, compute_dtype)

    # x / out stream over the batch grid (double-buffered by the pipeliner).
    # x's last dim == full array dim, so no 128-multiple requirement applies.
    in_specs = [pl.BlockSpec((block_b, in_size), lambda i: (i, 0))]
    # Weights + packed biases: constant index_map -> VMEM-resident across the
    # whole grid; single-buffered since they never change.
    for w in weights_pad:
        in_specs.append(
            pl.BlockSpec(w.shape, lambda i: (0, 0),
                         pipeline_mode=pl.Buffered(1)))
    in_specs.append(
        pl.BlockSpec(bias_pack.shape, lambda i: (0, 0),
                     pipeline_mode=pl.Buffered(1)))

    # TODO(synk): at very large batch, benchmark a bf16 (or width-output_size)
    # writeback to cut HBM write amplification of the 128-wide f32 slab.
    out_spec = pl.BlockSpec((block_b, out_pad_last), lambda i: (i, 0))

    # Real footprint + 2x headroom, clamped well under v7x's 64 MiB per TC.
    w_bytes = sum(math.prod(w.shape) * w.dtype.itemsize for w in weights_pad)
    resident = w_bytes + bias_pack.size * bias_pack.dtype.itemsize
    streams = 2 * block_b * (in_size + out_pad_last) * 4      # dbl-buffered x/out
    scratch = 4 * block_b * max_out_pad * 4                   # intermediates
    vmem_limit = int(min(max(2 * (resident + streams + scratch), 16 << 20),
                         40 << 20))

    return pl.pallas_call(
        kernel,
        out_shape=jax.ShapeDtypeStruct((batch_pad, out_pad_last), jnp.float32),
        grid=grid,
        in_specs=in_specs,
        out_specs=out_spec,
        compiler_params=pltpu.CompilerParams(
            dimension_semantics=("parallel",),   # megacore sharding on v7x
            vmem_limit_bytes=vmem_limit,
        ),
    )(x_pad, *weights_pad, bias_pack)


def mlp_forward(x, params: PreparedMLP, *, block_b=512):
    """Run the fused MLP Pallas kernel on (batch, input_size) f32 input."""
    batch = x.shape[0]
    assert x.shape[1] == params.input_size, "input feature dim mismatch"

    # Batch block: as large as useful (amortize per-step overhead), multiple of
    # 8 sublanes, but capped so the grid has >= 2 steps when batch > 8 so both
    # v7x TensorCores get work.
    bb = max(8, min(_round_up(block_b, 8), _round_up(batch, 8)))
    if batch > 8:
        bb = min(bb, _round_up((batch + 1) // 2, 8))
    bb = max(8, bb)
    batch_pad = _round_up(batch, bb)

    x = x.astype(jnp.float32)
    if batch_pad != batch:
        x = jnp.pad(x, ((0, batch_pad - batch), (0, 0)))

    out_pad = _mlp_forward_padded(
        x, params.weights_pad, params.bias_pack,
        block_b=bb, compute_dtype_name=params.compute_dtype_name)

    return out_pad[:batch, :params.output_size]


def init_network_params(key, input_size, hidden_sizes, output_size):
    """Deterministic init mimicking PyTorch nn.Linear default
    (uniform in [-1/sqrt(fan_in), 1/sqrt(fan_in)])."""
    layer_sizes = [input_size] + list(hidden_sizes) + [output_size]
    weights, biases = [], []
    for i in range(len(layer_sizes) - 1):
        fan_in, fan_out = layer_sizes[i], layer_sizes[i + 1]
        key, wk, bk = jax.random.split(key, 3)
        bound = 1.0 / math.sqrt(fan_in)
        # Stored as (in_f, out_f): PyTorch weight (out_f, in_f) transposed.
        w = jax.random.uniform(
            wk, (fan_in, fan_out), jnp.float32, minval=-bound, maxval=bound)
        b = jax.random.uniform(
            bk, (1, fan_out), jnp.float32, minval=-bound, maxval=bound)
        weights.append(w)
        biases.append(b)
    return weights, biases


def reference_forward(x, weights, biases):
    """Pure-JAX reference identical to Network.forward."""
    h = x
    for i in range(len(weights) - 1):
        h = jnp.maximum(h @ weights[i] + biases[i], 0.0)
    return h @ weights[-1] + biases[-1]


if __name__ == "__main__":
    key = jax.random.PRNGKey(0)

    # Small DQN-like config: state dim 16, hidden [32, 32], 4 actions.
    input_size = 16
    hidden_sizes = [32, 32]
    output_size = 4

    key, pk = jax.random.split(key)
    weights, biases = init_network_params(pk, input_size, hidden_sizes,
                                          output_size)

    # Params are padded/packed once, outside the step loop.
    params_f32 = prepare_params(weights, biases, compute_dtype=jnp.float32)

    # --- test 1: tiny batch (single grid step) ---
    key, xk = jax.random.split(key)
    x_small = jax.random.normal(xk, (8, input_size), jnp.float32)
    out_small = jax.block_until_ready(mlp_forward(x_small, params_f32))
    ref_small = reference_forward(x_small, weights, biases)
    assert out_small.shape == (8, output_size)
    assert jnp.allclose(out_small, ref_small, atol=1e-4, rtol=1e-4), \
        "mismatch vs reference (small batch)"

    # --- test 2: non-multiple batch exercising batch padding + >=2-step grid ---
    key, xk = jax.random.split(key)
    x_big = jax.random.normal(xk, (200, input_size), jnp.float32)
    out_big = jax.block_until_ready(mlp_forward(x_big, params_f32))
    ref_big = reference_forward(x_big, weights, biases)
    assert out_big.shape == (200, output_size)
    assert jnp.allclose(out_big, ref_big, atol=1e-4, rtol=1e-4), \
        "mismatch vs reference (batched grid)"

    # --- test 3: bf16 compute path (fast MXU path on v6e/v7x), loose tol ---
    params_bf16 = prepare_params(weights, biases, compute_dtype=jnp.bfloat16)
    out_bf16 = jax.block_until_ready(mlp_forward(x_big, params_bf16))
    assert out_bf16.shape == (200, output_size)
    assert jnp.allclose(out_bf16, ref_big, atol=5e-2, rtol=5e-2), \
        "mismatch vs reference (bf16 compute)"

    print("KERNEL_OK")
</pallas_src>

<mosaic_0001>
module attributes {stable_mosaic.version = 11 : i64} {
  func.func @kernel(%arg0: i32, %arg1: memref<8x16xf32, #tpu.memory_space<vmem>>, %arg2: memref<16x128xf32, #tpu.memory_space<vmem>>, %arg3: memref<128x128xf32, #tpu.memory_space<vmem>>, %arg4: memref<128x128xf32, #tpu.memory_space<vmem>>, %arg5: memref<3x128xf32, #tpu.memory_space<vmem>>, %arg6: memref<8x128xf32, #tpu.memory_space<vmem>>) attributes {dimension_semantics = [#tpu.dimension_semantics<parallel>], iteration_bounds = array<i64: 1>, scalar_prefetch = 0 : i64, scratch_operands = 0 : i64, tpu.core_type = #tpu.core_type<tc>, window_params = [{transform_indices = @transform_0, window_bounds = array<i64: 8, 16>}, {pipeline_mode = #tpu.pipeline_mode<synchronous>, transform_indices = @transform_1, window_bounds = array<i64: 16, 128>}, {pipeline_mode = #tpu.pipeline_mode<synchronous>, transform_indices = @transform_2, window_bounds = array<i64: 128, 128>}, {pipeline_mode = #tpu.pipeline_mode<synchronous>, transform_indices = @transform_3, window_bounds = array<i64: 128, 128>}, {pipeline_mode = #tpu.pipeline_mode<synchronous>, transform_indices = @transform_4, window_bounds = array<i64: 3, 128>}, {transform_indices = @transform_5, window_bounds = array<i64: 8, 128>}]} {
    %c0 = arith.constant 0 : index
    %c0_0 = arith.constant 0 : index
    %0 = vector.load %arg1[%c0, %c0_0] : memref<8x16xf32, #tpu.memory_space<vmem>>, vector<8x16xf32>
    %c0_1 = arith.constant 0 : index
    %c0_2 = arith.constant 0 : index
    %1 = vector.load %arg2[%c0_1, %c0_2] : memref<16x128xf32, #tpu.memory_space<vmem>>, vector<16x128xf32>
    %cst = arith.constant dense<0.000000e+00> : vector<8x128xf32>
    %2 = tpu.matmul %0, %1, %cst {dimension_numbers = #tpu.dot_dimension_numbers<[1], [0], [0], [1], [0, 0, 1, 1], [], []>} : vector<8x16xf32>, vector<16x128xf32>, vector<8x128xf32> -> vector<8x128xf32>
    %c0_3 = arith.constant 0 : index
    %c0_4 = arith.constant 0 : index
    %3 = vector.load %arg5[%c0_3, %c0_4] : memref<3x128xf32, #tpu.memory_space<vmem>>, vector<1x128xf32>
    %4 = vector.broadcast %3 : vector<1x128xf32> to vector<8x128xf32>
    %5 = arith.addf %2, %4 : vector<8x128xf32>
    %cst_5 = arith.constant 0.000000e+00 : f32
    %6 = vector.broadcast %cst_5 : f32 to vector<8x128xf32>
    %7 = arith.maximumf %5, %6 : vector<8x128xf32>
    %c0_6 = arith.constant 0 : index
    %c0_7 = arith.constant 0 : index
    %8 = vector.load %arg3[%c0_6, %c0_7] : memref<128x128xf32, #tpu.memory_space<vmem>>, vector<128x128xf32>
    %cst_8 = arith.constant dense<0.000000e+00> : vector<8x128xf32>
    %9 = tpu.matmul %7, %8, %cst_8 {dimension_numbers = #tpu.dot_dimension_numbers<[1], [0], [0], [1], [0, 0, 1, 1], [], []>} : vector<8x128xf32>, vector<128x128xf32>, vector<8x128xf32> -> vector<8x128xf32>
    %c1 = arith.constant 1 : index
    %c0_9 = arith.constant 0 : index
    %10 = vector.load %arg5[%c1, %c0_9] : memref<3x128xf32, #tpu.memory_space<vmem>>, vector<1x128xf32>
    %11 = vector.broadcast %10 : vector<1x128xf32> to vector<8x128xf32>
    %12 = arith.addf %9, %11 : vector<8x128xf32>
    %cst_10 = arith.constant 0.000000e+00 : f32
    %13 = vector.broadcast %cst_10 : f32 to vector<8x128xf32>
    %14 = arith.maximumf %12, %13 : vector<8x128xf32>
    %c0_11 = arith.constant 0 : index
    %c0_12 = arith.constant 0 : index
    %15 = vector.load %arg4[%c0_11, %c0_12] : memref<128x128xf32, #tpu.memory_space<vmem>>, vector<128x128xf32>
    %cst_13 = arith.constant dense<0.000000e+00> : vector<8x128xf32>
    %16 = tpu.matmul %14, %15, %cst_13 {dimension_numbers = #tpu.dot_dimension_numbers<[1], [0], [0], [1], [0, 0, 1, 1], [], []>} : vector<8x128xf32>, vector<128x128xf32>, vector<8x128xf32> -> vector<8x128xf32>
    %c2 = arith.constant 2 : index
    %c0_14 = arith.constant 0 : index
    %17 = vector.load %arg5[%c2, %c0_14] : memref<3x128xf32, #tpu.memory_space<vmem>>, vector<1x128xf32>
    %18 = vector.broadcast %17 : vector<1x128xf32> to vector<8x128xf32>
    %19 = arith.addf %16, %18 : vector<8x128xf32>
    %c0_15 = arith.constant 0 : index
    %c0_16 = arith.constant 0 : index
    %20 = vector.load %arg6[%c0_15, %c0_16] : memref<8x128xf32, #tpu.memory_space<vmem>>, vector<8x128xf32>
    tpu.vector_store %arg6[%c0_15, %c0_16], %19 {strides = array<i32>} : memref<8x128xf32, #tpu.memory_space<vmem>>, vector<8x128xf32>,
    return
  }
  func.func @transform_0(%arg0: i32) -> (i32, i32) {
    %c0_i32 = arith.constant 0 : i32
    %c0_i32_0 = arith.constant 0 : i32
    return %arg0, %c0_i32 : i32, i32
  }
  func.func @transform_1(%arg0: i32) -> (i32, i32) {
    %c0_i32 = arith.constant 0 : i32
    %c0_i32_0 = arith.constant 0 : i32
    %c0_i32_1 = arith.constant 0 : i32
    return %c0_i32, %c0_i32_0 : i32, i32
  }
  func.func @transform_2(%arg0: i32) -> (i32, i32) {
    %c0_i32 = arith.constant 0 : i32
    %c0_i32_0 = arith.constant 0 : i32
    %c0_i32_1 = arith.constant 0 : i32
    return %c0_i32, %c0_i32_0 : i32, i32
  }
  func.func @transform_3(%arg0: i32) -> (i32, i32) {
    %c0_i32 = arith.constant 0 : i32
    %c0_i32_0 = arith.constant 0 : i32
    %c0_i32_1 = arith.constant 0 : i32
    return %c0_i32, %c0_i32_0 : i32, i32
  }
  func.func @transform_4(%arg0: i32) -> (i32, i32) {
    %c0_i32 = arith.constant 0 : i32
    %c0_i32_0 = arith.constant 0 : i32
    %c0_i32_1 = arith.constant 0 : i32
    return %c0_i32, %c0_i32_0 : i32, i32
  }
  func.func @transform_5(%arg0: i32) -> (i32, i32) {
    %c0_i32 = arith.constant 0 : i32
    %c0_i32_0 = arith.constant 0 : i32
    return %arg0, %c0_i32 : i32, i32
  }
}

</mosaic_0001>

<bundles_post_ra>
// kernel: _mlp_forward_padded.1
= control target key start
LH: loop header
LB: loop body
LE: loop exit
PB: predicated region body
PF: predicated region fallthrough
CT: control target
= control target key end

     0   :  { %10 = vsyncpa [#allocation3], 0  ;;  %s705_s0 = inlined_call_operand.hbm [shape: f32[8,16], index: 0, kind: input, shape index: {}]   ;;  %s706_s1 = inlined_call_operand.hbm [shape: f32[16,128], index: 1, kind: input, shape index: {}]   ;;  %s707_s2 = inlined_call_operand.hbm [shape: f32[128,128], index: 2, kind: input, shape index: {}]   ;;  %s708_s3 = inlined_call_operand.hbm [shape: f32[128,128], index: 3, kind: input, shape index: {}]   ;;  %s709_s4 = inlined_call_operand.vmem [shape: f32[3,128], index: 4, kind: input, shape index: {}]   ;;  %s710_s5 = inlined_call_operand.hbm [shape: f32[8,128], index: 5, kind: output, shape index: {}]  }
   0x1   :  { %11 = vsyncpa [#allocation6], 0 }
   0x2   :  { %12 = vsyncpa [#allocation9], 0 }
   0x3   :  { %13 = vsyncpa [#allocation4], 0  ;;  %s593_s18 = smov [#allocation5]  }
   0x4   :  { %s29_s19 = sshll.u32 %s593_s18, 4  ;;  %s30_s19 = int_to_ptr.vmem [resolvable:$true] %s29_s19 }
   0x5   :  { %s493_s20 = scalar_lea.vmem %s30_s19, 256  ;;  %p498_p1 = scmp.lt.s32.totalorder %s30_s19, %s30_s19 }
   0x6   :  { %p494_p0 = scmp.ne.s32.totalorder %s30_s19, %s493_s20  ;;  %p499_p2 = scmp.lt.s32.totalorder %s493_s20, %s493_s20 }
   0x8   :  { %p500_p3 = por %p499_p2, %p498_p1 }
   0xa   :  { %p501_p4 = pnand %p500_p3, %p494_p0 }
   0xc   :  { %504 = shalt.err (!%p501_p4)
}
   0xd   :  { %s594_s21 = smov 128   ;;  %s595_s22 = smov 8  }
   0xe   :  { %35 = dma.hbm_to_vmem [thread:$0]  %s706_s1, 256, %s30_s19, [#allocation6], %s594_s21, %s594_s21, %s595_s22  }
   0xf   :  { %s596_s25 = smov [#allocation2]   ;;  %s597_s27 = smov [#allocation7]  }
  0x10   :  { %s20_s26 = sshll.u32 %s596_s25, 4  ;;  %s41_s28 = sshll.u32 %s597_s27, 4  ;;  %s21_s26 = int_to_ptr.vmem [resolvable:$true] %s20_s26  ;;  %s42_s28 = int_to_ptr.vmem [resolvable:$true] %s41_s28 }
  0x11   :  { %s513_s29 = scalar_lea.vmem %s21_s26, 128  ;;  %p518_p6 = scmp.lt.s32.totalorder %s21_s26, %s21_s26 }
  0x12   :  { %p514_p5 = scmp.ne.s32.totalorder %s21_s26, %s513_s29  ;;  %p519_p7 = scmp.lt.s32.totalorder %s513_s29, %s513_s29 }
  0x14   :  { %p520_p8 = por %p519_p7, %p518_p6 }
  0x16   :  { %p521_p9 = pnand %p520_p8, %p514_p5 }
  0x18   :  { %524 = shalt.err (!%p521_p9)
}
  0x19   :  { %23 = dma.hbm_to_vmem [thread:$0]  %s705_s0, 128, %s21_s26, [#allocation3]  }
  0x1a   :  { %s533_s7 = scalar_lea.vmem %s42_s28, 2048  ;;  %p538_p11 = scmp.lt.s32.totalorder %s42_s28, %s42_s28 }
  0x1b   :  { %p534_p10 = scmp.ne.s32.totalorder %s42_s28, %s533_s7  ;;  %p539_p12 = scmp.lt.s32.totalorder %s533_s7, %s533_s7 }
  0x1d   :  { %p540_p13 = por %p539_p12, %p538_p11 }
  0x1f   :  { %p541_p0 = pnand %p540_p13, %p534_p10 }
  0x21   :  { %544 = shalt.err (!%p541_p0)
}
  0x22   :  { %47 = dma.hbm_to_vmem [thread:$0]  %s707_s2, 2048, %s42_s28, [#allocation6], %s594_s21, %s594_s21, %s595_s22  }
  0x23   :  { %s598_s9 = smov [#allocation8]  }
  0x24   :  { %s53_s10 = sshll.u32 %s598_s9, 4  ;;  %s54_s10 = int_to_ptr.vmem [resolvable:$true] %s53_s10 }
  0x25   :  { %s553_s11 = scalar_lea.vmem %s54_s10, 2048  ;;  %p558_p2 = scmp.lt.s32.totalorder %s54_s10, %s54_s10 }
  0x26   :  { %p554_p1 = scmp.ne.s32.totalorder %s54_s10, %s553_s11  ;;  %p559_p3 = scmp.lt.s32.totalorder %s553_s11, %s553_s11 }
  0x28   :  { %p560_p4 = por %p559_p3, %p558_p2 }
  0x2a   :  { %p561_p5 = pnand %p560_p4, %p554_p1 }
  0x2c   :  { %564 = shalt.err (!%p561_p5)
}
  0x2d   :  { %59 = dma.hbm_to_vmem [thread:$0]  %s708_s3, 2048, %s54_s10, [#allocation9], %s594_s21, %s594_s21, %s595_s22  }
  0x2e   :  { %585 = dma.done.wait [#allocation3], 128  }
  0x2f   :  { %586 = vsyncadd [#allocation3], 4294967168 }
  0x30   :  { %587 = dma.done.wait [#allocation6], 2304  }
  0x31   :  { %588 = vsyncadd [#allocation6], 4294964992 }
  0x32   :  { %589 = dma.done.wait [#allocation9], 2048  }
  0x33   :  { %590 = vsyncadd [#allocation9], 4294965248  ;;  %v599_v0 = vmov 0.0   ;;  %vm600_vm0 = vmmov 0   ;;  %v76_v1 = vld [vmem:[#allocation5 + $0x8] sm:$0xff]  ;;  %v75_v2 = vld [vmem:[#allocation5] sm:$0xff] }
  0x34   :  { %399 = vmatprep.subr.mxu0 %v599_v0  ;;  %403 = vmatprep.mubr.msk.f32.mxu0 %vm600_vm0, %v599_v0  ;;  %v74_v3 = vld [vmem:[#allocation2] sm:$0xff]  ;;  %vm82_vm1 = vcmask 130048   ;;  %v172_v4 = vld [vmem:[#allocation7 + $0x78] sm:$0xff]  ;;  %v171_v5 = vld [vmem:[#allocation7 + $0x70] sm:$0xff]  ;;  %s601_s17 = smov [#allocation10]  }
  0x35   :  { %406 = vmatprep.subr.mxu1 %v599_v0  ;;  %438 = vmatprep.mubr.msk.f32.mxu1 %vm600_vm0, %v599_v0  ;;  %v170_v6 = vld [vmem:[#allocation7 + $0x68] sm:$0xff]  ;;  %v169_v7 = vld [vmem:[#allocation7 + $0x60] sm:$0xff]  ;;  %v168_v8 = vld [vmem:[#allocation7 + $0x58] sm:$0xff]  ;;  %s347_s18 = sshll.u32 %s601_s17, 4  ;;  %s348_s18 = int_to_ptr.vmem [resolvable:$true] %s347_s18 }
  0x36   :  { %400 = vmatpush3.msra.mxu0 %v76_v1  ;;  %407 = vmatpush3.msra.mxu1 %v172_v4  ;;  %v167_v9 = vld [vmem:[#allocation7 + $0x50] sm:$0xff]  ;;  %v166_v10 = vld [vmem:[#allocation7 + $0x48] sm:$0xff]  ;;  %v165_v11 = vld [vmem:[#allocation7 + $0x40] sm:$0xff]  ;;  %s565_s19 = scalar_lea.vmem %s348_s18, 128  ;;  %p570_p7 = scmp.lt.s32.totalorder %s348_s18, %s348_s18 }
  0x37   :  { %401 = vmatprep.subr.mxu0 %v599_v0  ;;  %408 = vmatprep.subr.mxu1 %v599_v0  ;;  %v164_v12 = vld [vmem:[#allocation7 + $0x38] sm:$0xff]  ;;  %v163_v13 = vld [vmem:[#allocation7 + $0x30] sm:$0xff]  ;;  %v162_v14 = vld [vmem:[#allocation7 + $0x28] sm:$0xff]  ;;  %p566_p6 = scmp.ne.s32.totalorder %s348_s18, %s565_s19  ;;  %p571_p8 = scmp.lt.s32.totalorder %s565_s19, %s565_s19 }
  0x38   :  { %402 = vmatpush3.msra.mxu0 %v75_v2  ;;  %409 = vmatpush3.msra.mxu1 %v171_v5  ;;  %v161_v15 = vld [vmem:[#allocation7 + $0x20] sm:$0xff]  ;;  %v160_v16 = vld [vmem:[#allocation7 + $0x18] sm:$0xff]  ;;  %v159_v17 = vld [vmem:[#allocation7 + $0x10] sm:$0xff] }
  0x39   :  { %404 = vmatmul.mubr.msk.f32.vlgmr.msra.gmra.mxu0 %vm82_vm1, %v74_v3  ;;  %410 = vmatprep.subr.mxu1 %v599_v0  ;;  %v158_v18 = vld [vmem:[#allocation7 + $0x8] sm:$0xff]  ;;  %v157_v19 = vld [vmem:[#allocation7] sm:$0xff]  ;;  %v264_v20 = vld [vmem:[#allocation8 + $0x78] sm:$0xff]  ;;  %p572_p9 = por %p571_p8, %p570_p7 }
  0x3a   :  { %441 = vmatprep.subr.mxu0 %v599_v0  ;;  %411 = vmatpush3.msra.mxu1 %v170_v6  ;;  %v263_v21 = vld [vmem:[#allocation8 + $0x70] sm:$0xff]  ;;  %v262_v22 = vld [vmem:[#allocation8 + $0x68] sm:$0xff]  ;;  %v261_v23 = vld [vmem:[#allocation8 + $0x60] sm:$0xff] }
  0x3b   :  { %473 = vmatprep.mubr.msk.f32.mxu0 %vm600_vm0, %v599_v0  ;;  %412 = vmatprep.subr.mxu1 %v599_v0  ;;  %v260_v24 = vld [vmem:[#allocation8 + $0x58] sm:$0xff]  ;;  %v259_v25 = vld [vmem:[#allocation8 + $0x50] sm:$0xff]  ;;  %v258_v26 = vld [vmem:[#allocation8 + $0x48] sm:$0xff]  ;;  %p573_p10 = pnand %p572_p9, %p566_p6 }
  0x3c   :  { %413 = vmatpush3.msra.mxu1 %v169_v7  ;;  %442 = vmatpush3.msra.mxu0 %v264_v20  ;;  %v257_v27 = vld [vmem:[#allocation8 + $0x40] sm:$0xff]  ;;  %v256_v28 = vld [vmem:[#allocation8 + $0x38] sm:$0xff]  ;;  %v255_v29 = vld [vmem:[#allocation8 + $0x30] sm:$0xff] }
  0x3d   :  { %414 = vmatprep.subr.mxu1 %v599_v0  ;;  %443 = vmatprep.subr.mxu0 %v599_v0  ;;  %v254_v30 = vld [vmem:[#allocation8 + $0x28] sm:$0xff]  ;;  %v253_v31 = vld [vmem:[#allocation8 + $0x20] sm:$0xff]  ;;  %v252_v32 = vld [vmem:[#allocation8 + $0x18] sm:$0xff] }
  0x3e   :  { %415 = vmatpush3.msra.mxu1 %v168_v8  ;;  %444 = vmatpush3.msra.mxu0 %v263_v21  ;;  %v358_v33 = vld [vmem:[%s709_s4] ss:$0 sm:$0xff]  ;;  %v251_v38 = vld [vmem:[#allocation8 + $0x10] sm:$0xff]  ;;  %v249_v40 = vld [vmem:[#allocation8] sm:$0xff] }
  0x3f   :  { %416 = vmatprep.subr.mxu1 %v599_v0  ;;  %445 = vmatprep.subr.mxu0 %v599_v0  ;;  %v250_v39 = vld [vmem:[#allocation8 + $0x8] sm:$0xff] }
  0x40   :  { %417 = vmatpush3.msra.mxu1 %v167_v9  ;;  %446 = vmatpush3.msra.mxu0 %v262_v22  ;;  %v360_v41 = vld [vmem:[%s709_s4 + $0x1] ss:$0 sm:$0xff]  ;;  %v361_v46 = vld [vmem:[%s709_s4 + $0x2] ss:$0 sm:$0xff] }
  0x41   :  { %418 = vmatprep.subr.mxu1 %v599_v0  ;;  %447 = vmatprep.subr.mxu0 %v599_v0 }
  0x42   :  { %419 = vmatpush3.msra.mxu1 %v166_v10  ;;  %448 = vmatpush3.msra.mxu0 %v261_v23 }
  0x43   :  { %420 = vmatprep.subr.mxu1 %v599_v0  ;;  %449 = vmatprep.subr.mxu0 %v599_v0 }
  0x44   :  { %421 = vmatpush3.msra.mxu1 %v165_v11  ;;  %450 = vmatpush3.msra.mxu0 %v260_v24 }
  0x45   :  { %422 = vmatprep.subr.mxu1 %v599_v0  ;;  %451 = vmatprep.subr.mxu0 %v599_v0 }
  0x46   :  { %423 = vmatpush3.msra.mxu1 %v164_v12  ;;  %452 = vmatpush3.msra.mxu0 %v259_v25 }
  0x47   :  { %424 = vmatprep.subr.mxu1 %v599_v0  ;;  %453 = vmatprep.subr.mxu0 %v599_v0 }
  0x48   :  { %425 = vmatpush3.msra.mxu1 %v163_v13  ;;  %454 = vmatpush3.msra.mxu0 %v258_v26 }
  0x49   :  { %426 = vmatprep.subr.mxu1 %v599_v0  ;;  %455 = vmatprep.subr.mxu0 %v599_v0 }
  0x4a   :  { %427 = vmatpush3.msra.mxu1 %v162_v14  ;;  %456 = vmatpush3.msra.mxu0 %v257_v27 }
  0x4b   :  { %428 = vmatprep.subr.mxu1 %v599_v0  ;;  %457 = vmatprep.subr.mxu0 %v599_v0 }
  0x4c   :  { %429 = vmatpush3.msra.mxu1 %v161_v15  ;;  %458 = vmatpush3.msra.mxu0 %v256_v28 }
  0x4d   :  { %430 = vmatprep.subr.mxu1 %v599_v0  ;;  %459 = vmatprep.subr.mxu0 %v599_v0 }
  0x4e   :  { %431 = vmatpush3.msra.mxu1 %v160_v16  ;;  %460 = vmatpush3.msra.mxu0 %v255_v29 }
  0x4f   :  { %432 = vmatprep.subr.mxu1 %v599_v0  ;;  %461 = vmatprep.subr.mxu0 %v599_v0 }
  0x50   :  { %433 = vmatpush3.msra.mxu1 %v159_v17  ;;  %462 = vmatpush3.msra.mxu0 %v254_v30 }
  0x51   :  { %434 = vmatprep.subr.mxu1 %v599_v0  ;;  %463 = vmatprep.subr.mxu0 %v599_v0 }
  0x52   :  { %435 = vmatpush3.msra.mxu1 %v158_v18  ;;  %464 = vmatpush3.msra.mxu0 %v253_v31 }
  0x53   :  { %436 = vmatprep.subr.mxu1 %v599_v0  ;;  %465 = vmatprep.subr.mxu0 %v599_v0 }
  0x54   :  { %437 = vmatpush3.msra.mxu1 %v157_v19  ;;  %466 = vmatpush3.msra.mxu0 %v252_v32 }
  0x55   :  { %467 = vmatprep.subr.mxu0 %v599_v0 }
  0x56   :  { %468 = vmatpush3.msra.mxu0 %v251_v38 }
  0x57   :  { %469 = vmatprep.subr.mxu0 %v599_v0 }
  0x58   :  { %470 = vmatpush3.msra.mxu0 %v250_v39 }
  0x59   :  { %471 = vmatprep.subr.mxu0 %v599_v0 }
  0x5a   :  { %472 = vmatpush3.msra.mxu0 %v249_v40 }
  0xf9   :  { %v152_v34 = vpop.f32.mrf.mxu0 }
  0xfa   :  { %v153_v35 = vadd.f32 %v358_v33, %v152_v34 }
  0xfb   :  { %v405_v36 = vpop.f32.mrf.mxu0 }
  0xfc   :  { %v156_v37 = vmax.f32 %v153_v35, 0.0 }
  0xfe   :  { %439 = vmatmul.mubr.f32.vlgmr.msra.gmra.mxu1 %v156_v37 }
 0x1be   :  { %v244_v42 = vpop.f32.mrf.mxu1 }
 0x1bf   :  { %v245_v43 = vadd.f32 %v360_v41, %v244_v42 }
 0x1c0   :  { %v440_v44 = vpop.f32.mrf.mxu1 }
 0x1c1   :  { %v248_v45 = vmax.f32 %v245_v43, 0.0 }
 0x1c3   :  { %474 = vmatmul.mubr.f32.vlgmr.msra.gmra.mxu0 %v248_v45 }
 0x283   :  { %v336_v47 = vpop.f32.mrf.mxu0 }
 0x284   :  { %v337_v48 = vadd.f32 %v361_v46, %v336_v47 }
 0x285   :  { %v475_v49 = vpop.f32.mrf.mxu0 }
 0x286   :  { %340 = vst [vmem:[#allocation10] sm:$0xff] %v337_v48 }
 0x287   :  { %576 = shalt.err (!%p573_p10)
}
 0x288   :  { %350 = dma.vmem_to_hbm [thread:$0]  %s348_s18, 128, %s710_s5, [#allocation4]  }
 0x289   :  { %591 = dma.done.wait [#allocation4], 128  }
 0x28a   :  { %592 = vsyncadd [#allocation4], 4294967168 }
 0x28b   :  { %354 = vsyncpa [#allocation3], 1 }
 0x28c   :  { %355 = vsyncpa [#allocation6], 1 }
 0x28d   :  { %356 = vsyncpa [#allocation9], 1 }
 0x28e   :  { %357 = vsyncpa [#allocation4], 1 }

</bundles_post_ra>
